<compile_context>
chip_gen: v7x
topology: tpu7x:2x2x1
jax: 0.10.0
libtpu: 0.0.40
codegen_flags: <defaults>
</compile_context>

<pallas_src>
import jax
import jax.numpy as jnp
from jax.experimental import pallas as pl
from jax.experimental.pallas import tpu as pltpu


def identity_block_kernel(x_ref, w1_ref, b1_ref, w2_ref, b2_ref, w3_ref, b3_ref,
                          o_ref):
    # x_ref : (H, W*Cout) f32        one image, W and channels packed on lanes
    # w1_ref: (W*Cout, W*Cin) bf16   block-diagonal 1x1 conv (BN1 folded)
    # b1_ref: (1, W*Cin)  f32
    # w2_ref: (3*W*Cin, W*Cin) bf16  3x3 conv: dx taps folded into a banded
    #                                matrix, dy taps stacked along K
    # b2_ref: (1, W*Cin)  f32
    # w3_ref: (W*Cin, W*Cout) bf16   block-diagonal 1x1 conv (BN3 folded)
    # b3_ref: (1, W*Cout) f32
    # o_ref : (H, W*Cout)
    H = x_ref.shape[0]
    wcin = w1_ref.shape[1]

    x = x_ref[...]                                        # f32, kept for residual

    # ---- conv1 (1x1) + folded BN1 + ReLU: one lane-dense matmul ----
    h1 = jnp.dot(x.astype(jnp.bfloat16), w1_ref[...],
                 preferred_element_type=jnp.float32) + b1_ref[...]
    h1 = jnp.maximum(h1, 0.0)                             # (H, W*Cin) f32

    # ---- conv2 (3x3, pad=1) as ONE im2col matmul ----
    # dy = -1 / 0 / +1 row shifts (zero-filled at the borders); the dx shifts
    # live inside w2_ref's band structure, so only 3 copies are needed.
    zrow = jnp.zeros((1, wcin), jnp.float32)
    up = jnp.concatenate([zrow, h1[:H - 1, :]], axis=0)   # h1[y-1]
    dn = jnp.concatenate([h1[1:, :], zrow], axis=0)       # h1[y+1]
    im2col = jnp.concatenate(
        [up.astype(jnp.bfloat16), h1.astype(jnp.bfloat16), dn.astype(jnp.bfloat16)],
        axis=1)                                           # (H, 3*W*Cin)
    h2 = jnp.dot(im2col, w2_ref[...],
                 preferred_element_type=jnp.float32) + b2_ref[...]
    h2 = jnp.maximum(h2, 0.0)                             # (H, W*Cin) f32

    # ---- conv3 (1x1) + folded BN3 (no ReLU) + residual in f32 ----
    h3 = jnp.dot(h2.astype(jnp.bfloat16), w3_ref[...],
                 preferred_element_type=jnp.float32) + b3_ref[...]
    o_ref[...] = (h3 + x).astype(o_ref.dtype)


def identity_block(x_nhwc, packed):
    """x_nhwc: (N, H, W, Cout) f32. packed: lane-dense block weights/shifts."""
    w1b, b1b, w2b, b2b, w3b, b3b = packed
    N, H, W, Cout = x_nhwc.shape
    wcout = W * Cout
    wcin = w1b.shape[1]

    x_packed = x_nhwc.reshape(N, H, wcout)                # contiguous, no transpose

    out = pl.pallas_call(
        identity_block_kernel,
        out_shape=jax.ShapeDtypeStruct((N, H, wcout), x_nhwc.dtype),
        grid_spec=pltpu.PrefetchScalarGridSpec(
            num_scalar_prefetch=0,
            grid=(N,),
            in_specs=[
                pl.BlockSpec((None, H, wcout), lambda i: (i, 0, 0)),   # x (per image)
                pl.BlockSpec((wcout, wcin), lambda i: (0, 0)),         # w1 block-diag
                pl.BlockSpec((1, wcin), lambda i: (0, 0)),             # b1
                pl.BlockSpec((3 * wcin, wcin), lambda i: (0, 0)),      # w2 banded
                pl.BlockSpec((1, wcin), lambda i: (0, 0)),             # b2
                pl.BlockSpec((wcin, wcout), lambda i: (0, 0)),         # w3 block-diag
                pl.BlockSpec((1, wcout), lambda i: (0, 0)),            # b3
            ],
            out_specs=pl.BlockSpec((None, H, wcout), lambda i: (i, 0, 0)),
        ),
        compiler_params=pltpu.CompilerParams(dimension_semantics=("parallel",)),
    )(x_packed, w1b, b1b, w2b, b2b, w3b, b3b)
    return out.reshape(N, H, W, Cout)


def make_params(key, cin, cout):
    """Deterministic synthetic parameters; BN (eval mode) folded into conv weights."""
    eps = 1e-5
    ks = jax.random.split(key, 15)

    def bn_fold(k0, k1, k2, k3, c):
        gamma = 1.0 + 0.1 * jax.random.normal(k0, (c,), jnp.float32)
        beta = 0.1 * jax.random.normal(k1, (c,), jnp.float32)
        mean = 0.1 * jax.random.normal(k2, (c,), jnp.float32)
        var = jax.nn.softplus(jax.random.normal(k3, (c,), jnp.float32)) + 0.5
        scale = gamma / jnp.sqrt(var + eps)
        shift = beta - mean * scale
        return scale, shift

    # PyTorch conv weight layouts: (out_ch, in_ch, kH, kW)
    w1 = 0.3 * jax.random.normal(ks[0], (cin, cout, 1, 1), jnp.float32)
    w2 = 0.3 * jax.random.normal(ks[1], (cin, cin, 3, 3), jnp.float32)
    w3 = 0.3 * jax.random.normal(ks[2], (cout, cin, 1, 1), jnp.float32)

    s1, sh1 = bn_fold(ks[3], ks[4], ks[5], ks[6], cin)
    s2, sh2 = bn_fold(ks[7], ks[8], ks[9], ks[10], cin)
    s3, sh3 = bn_fold(ks[11], ks[12], ks[13], ks[14], cout)

    # Fold BN scale into conv weights (per output channel), shift stays additive.
    w1f = w1[:, :, 0, 0].T * s1[None, :]                  # (cout, cin)
    b1 = sh1.reshape(1, cin)
    w2f = jnp.transpose(w2, (2, 3, 1, 0)) * s2[None, None, None, :]  # HWIO (3,3,cin,cin)
    b2 = sh2.reshape(1, cin)
    w3f = w3[:, :, 0, 0].T * s3[None, :]                  # (cin, cout)
    b3 = sh3.reshape(1, cout)
    return (w1f, b1, w2f, b2, w3f, b3)


def pack_params(params, W):
    """Re-pack folded per-channel weights into lane-dense (W*C)-wide block matrices."""
    w1f, b1, w2f, b2, w3f, b3 = params
    cout, cin = w1f.shape
    eye_w = jnp.eye(W, dtype=jnp.float32)
    w1_big = jnp.kron(eye_w, w1f)                         # (W*Cout, W*Cin) block-diag
    w3_big = jnp.kron(eye_w, w3f)                         # (W*Cin, W*Cout) block-diag
    # 3x3 conv: fold horizontal (dx) taps into a block-banded matrix per vertical
    # tap dy, then stack the 3 dy blocks along the contraction axis.
    dy_blocks = []
    for dy in range(3):
        blk = jnp.zeros((W * cin, W * cin), jnp.float32)
        for dx in range(3):
            shift = jnp.eye(W, k=1 - dx, dtype=jnp.float32)  # out col w <- in col w+dx-1
            blk = blk + jnp.kron(shift, w2f[dy, dx])
        dy_blocks.append(blk)
    w2_big = jnp.concatenate(dy_blocks, axis=0)           # (3*W*Cin, W*Cin)
    b1_big = jnp.tile(b1, (1, W))                         # (1, W*Cin)
    b2_big = jnp.tile(b2, (1, W))                         # (1, W*Cin)
    b3_big = jnp.tile(b3, (1, W))                         # (1, W*Cout)
    return (w1_big.astype(jnp.bfloat16), b1_big,
            w2_big.astype(jnp.bfloat16), b2_big,
            w3_big.astype(jnp.bfloat16), b3_big)


def ref_forward(x_nhwc, params):
    """Pure-JAX NHWC reference using lax convolutions (same folded params, f32)."""
    w1f, b1, w2f, b2, w3f, b3 = params
    cin, cout = w3f.shape
    dn = ("NHWC", "HWIO", "NHWC")
    h = jax.lax.conv_general_dilated(x_nhwc, w1f[None, None], (1, 1), "VALID",
                                     dimension_numbers=dn) + b1.reshape(1, 1, 1, cin)
    h = jax.nn.relu(h)
    h = jax.lax.conv_general_dilated(h, w2f, (1, 1), "SAME",
                                     dimension_numbers=dn) + b2.reshape(1, 1, 1, cin)
    h = jax.nn.relu(h)
    h = jax.lax.conv_general_dilated(h, w3f[None, None], (1, 1), "VALID",
                                     dimension_numbers=dn) + b3.reshape(1, 1, 1, cout)
    return h + x_nhwc


if __name__ == "__main__":
    key = jax.random.PRNGKey(0)
    kx, kp = jax.random.split(key)

    # n_filters = (_in, _out) = (4, 8); input has _out channels.
    N, H, W = 2, 16, 16
    cin, cout = 4, 8

    x_nchw = jax.random.normal(kx, (N, cout, H, W), jnp.float32)  # PyTorch NCHW input
    params = make_params(kp, cin, cout)
    packed = pack_params(params, W)

    x_nhwc = jnp.transpose(x_nchw, (0, 2, 3, 1))                  # NCHW -> NHWC
    out_nhwc = identity_block(x_nhwc, packed)
    out_nchw = jnp.transpose(out_nhwc, (0, 3, 1, 2))              # back to NCHW
    jax.block_until_ready(out_nchw)

    ref = ref_forward(x_nhwc, params)
    # bf16 MXU operands vs f32 reference -> relaxed tolerance (per review).
    assert jnp.allclose(out_nhwc, ref, atol=7e-2, rtol=2e-2), "mismatch vs reference"

    print("KERNEL_OK")
</pallas_src>

<mosaic_0001>
module attributes {stable_mosaic.version = 11 : i64} {
  func.func @identity_block_kernel(%arg0: i32, %arg1: memref<1x16x128xf32, #tpu.memory_space<vmem>>, %arg2: memref<128x64xbf16, #tpu.memory_space<vmem>>, %arg3: memref<1x64xf32, #tpu.memory_space<vmem>>, %arg4: memref<192x64xbf16, #tpu.memory_space<vmem>>, %arg5: memref<1x64xf32, #tpu.memory_space<vmem>>, %arg6: memref<64x128xbf16, #tpu.memory_space<vmem>>, %arg7: memref<1x128xf32, #tpu.memory_space<vmem>>, %arg8: memref<1x16x128xf32, #tpu.memory_space<vmem>>) attributes {dimension_semantics = [#tpu.dimension_semantics<parallel>], iteration_bounds = array<i64: 2>, scalar_prefetch = 0 : i64, scratch_operands = 0 : i64, tpu.core_type = #tpu.core_type<tc>, window_params = [{transform_indices = @transform_0, window_bounds = array<i64: 1, 16, 128>}, {pipeline_mode = #tpu.pipeline_mode<synchronous>, transform_indices = @transform_1, window_bounds = array<i64: 128, 64>}, {pipeline_mode = #tpu.pipeline_mode<synchronous>, transform_indices = @transform_2, window_bounds = array<i64: 1, 64>}, {pipeline_mode = #tpu.pipeline_mode<synchronous>, transform_indices = @transform_3, window_bounds = array<i64: 192, 64>}, {pipeline_mode = #tpu.pipeline_mode<synchronous>, transform_indices = @transform_4, window_bounds = array<i64: 1, 64>}, {pipeline_mode = #tpu.pipeline_mode<synchronous>, transform_indices = @transform_5, window_bounds = array<i64: 64, 128>}, {pipeline_mode = #tpu.pipeline_mode<synchronous>, transform_indices = @transform_6, window_bounds = array<i64: 1, 128>}, {transform_indices = @transform_7, window_bounds = array<i64: 1, 16, 128>}]} {
    %c0 = arith.constant 0 : index
    %c0_0 = arith.constant 0 : index
    %c0_1 = arith.constant 0 : index
    %0 = vector.load %arg1[%c0, %c0_0, %c0_1] : memref<1x16x128xf32, #tpu.memory_space<vmem>>, vector<1x16x128xf32>
    %1 = vector.shape_cast %0 : vector<1x16x128xf32> to vector<16x128xf32>
    %2 = arith.truncf %1 : vector<16x128xf32> to vector<16x128xbf16>
    %c0_2 = arith.constant 0 : index
    %c0_3 = arith.constant 0 : index
    %3 = vector.load %arg2[%c0_2, %c0_3] : memref<128x64xbf16, #tpu.memory_space<vmem>>, vector<128x64xbf16>
    %cst = arith.constant dense<0.000000e+00> : vector<16x64xf32>
    %4 = tpu.matmul %2, %3, %cst {dimension_numbers = #tpu.dot_dimension_numbers<[1], [0], [0], [1], [0, 0, 1, 1], [], []>} : vector<16x128xbf16>, vector<128x64xbf16>, vector<16x64xf32> -> vector<16x64xf32>
    %c0_4 = arith.constant 0 : index
    %c0_5 = arith.constant 0 : index
    %5 = vector.load %arg3[%c0_4, %c0_5] : memref<1x64xf32, #tpu.memory_space<vmem>>, vector<1x64xf32>
    %6 = vector.broadcast %5 : vector<1x64xf32> to vector<16x64xf32>
    %7 = arith.addf %4, %6 : vector<16x64xf32>
    %cst_6 = arith.constant 0.000000e+00 : f32
    %8 = vector.broadcast %cst_6 : f32 to vector<16x64xf32>
    %9 = arith.maximumf %7, %8 : vector<16x64xf32>
    %cst_7 = arith.constant 0.000000e+00 : f32
    %10 = vector.broadcast %cst_7 : f32 to vector<1x64xf32>
    %11 = vector.extract_strided_slice %9 {offsets = [0, 0], sizes = [15, 64], strides = [1, 1]} : vector<16x64xf32> to vector<15x64xf32>
    %12 = tpu.concatenate %10, %11 in 0 : vector<1x64xf32>, vector<15x64xf32> -> vector<16x64xf32>
    %13 = vector.extract_strided_slice %9 {offsets = [1, 0], sizes = [15, 64], strides = [1, 1]} : vector<16x64xf32> to vector<15x64xf32>
    %14 = tpu.concatenate %13, %10 in 0 : vector<15x64xf32>, vector<1x64xf32> -> vector<16x64xf32>
    %15 = arith.truncf %12 : vector<16x64xf32> to vector<16x64xbf16>
    %16 = arith.truncf %9 : vector<16x64xf32> to vector<16x64xbf16>
    %17 = arith.truncf %14 : vector<16x64xf32> to vector<16x64xbf16>
    %18 = tpu.concatenate %15, %16, %17 in 1 : vector<16x64xbf16>, vector<16x64xbf16>, vector<16x64xbf16> -> vector<16x192xbf16>
    %c0_8 = arith.constant 0 : index
    %c0_9 = arith.constant 0 : index
    %19 = vector.load %arg4[%c0_8, %c0_9] : memref<192x64xbf16, #tpu.memory_space<vmem>>, vector<192x64xbf16>
    %cst_10 = arith.constant dense<0.000000e+00> : vector<16x64xf32>
    %20 = tpu.matmul %18, %19, %cst_10 {dimension_numbers = #tpu.dot_dimension_numbers<[1], [0], [0], [1], [0, 0, 1, 1], [], []>} : vector<16x192xbf16>, vector<192x64xbf16>, vector<16x64xf32> -> vector<16x64xf32>
    %c0_11 = arith.constant 0 : index
    %c0_12 = arith.constant 0 : index
    %21 = vector.load %arg5[%c0_11, %c0_12] : memref<1x64xf32, #tpu.memory_space<vmem>>, vector<1x64xf32>
    %22 = vector.broadcast %21 : vector<1x64xf32> to vector<16x64xf32>
    %23 = arith.addf %20, %22 : vector<16x64xf32>
    %cst_13 = arith.constant 0.000000e+00 : f32
    %24 = vector.broadcast %cst_13 : f32 to vector<16x64xf32>
    %25 = arith.maximumf %23, %24 : vector<16x64xf32>
    %26 = arith.truncf %25 : vector<16x64xf32> to vector<16x64xbf16>
    %c0_14 = arith.constant 0 : index
    %c0_15 = arith.constant 0 : index
    %27 = vector.load %arg6[%c0_14, %c0_15] : memref<64x128xbf16, #tpu.memory_space<vmem>>, vector<64x128xbf16>
    %cst_16 = arith.constant dense<0.000000e+00> : vector<16x128xf32>
    %28 = tpu.matmul %26, %27, %cst_16 {dimension_numbers = #tpu.dot_dimension_numbers<[1], [0], [0], [1], [0, 0, 1, 1], [], []>} : vector<16x64xbf16>, vector<64x128xbf16>, vector<16x128xf32> -> vector<16x128xf32>
    %c0_17 = arith.constant 0 : index
    %c0_18 = arith.constant 0 : index
    %29 = vector.load %arg7[%c0_17, %c0_18] : memref<1x128xf32, #tpu.memory_space<vmem>>, vector<1x128xf32>
    %30 = vector.broadcast %29 : vector<1x128xf32> to vector<16x128xf32>
    %31 = arith.addf %28, %30 : vector<16x128xf32>
    %32 = arith.addf %31, %1 : vector<16x128xf32>
    %c0_19 = arith.constant 0 : index
    %c0_20 = arith.constant 0 : index
    %c0_21 = arith.constant 0 : index
    %33 = vector.load %arg8[%c0_19, %c0_20, %c0_21] : memref<1x16x128xf32, #tpu.memory_space<vmem>>, vector<1x16x128xf32>
    %34 = vector.shape_cast %33 : vector<1x16x128xf32> to vector<16x128xf32>
    %35 = vector.shape_cast %32 : vector<16x128xf32> to vector<1x16x128xf32>
    tpu.vector_store %arg8[%c0_19, %c0_20, %c0_21], %35 {strides = array<i32>} : memref<1x16x128xf32, #tpu.memory_space<vmem>>, vector<1x16x128xf32>,
    return
  }
  func.func @transform_0(%arg0: i32) -> (i32, i32, i32) {
    %c0_i32 = arith.constant 0 : i32
    %c0_i32_0 = arith.constant 0 : i32
    %c0_i32_1 = arith.constant 0 : i32
    return %arg0, %c0_i32, %c0_i32_0 : i32, i32, i32
  }
  func.func @transform_1(%arg0: i32) -> (i32, i32) {
    %c0_i32 = arith.constant 0 : i32
    %c0_i32_0 = arith.constant 0 : i32
    %c0_i32_1 = arith.constant 0 : i32
    return %c0_i32, %c0_i32_0 : i32, i32
  }
  func.func @transform_2(%arg0: i32) -> (i32, i32) {
    %c0_i32 = arith.constant 0 : i32
    %c0_i32_0 = arith.constant 0 : i32
    %c0_i32_1 = arith.constant 0 : i32
    return %c0_i32, %c0_i32_0 : i32, i32
  }
  func.func @transform_3(%arg0: i32) -> (i32, i32) {
    %c0_i32 = arith.constant 0 : i32
    %c0_i32_0 = arith.constant 0 : i32
    %c0_i32_1 = arith.constant 0 : i32
    return %c0_i32, %c0_i32_0 : i32, i32
  }
  func.func @transform_4(%arg0: i32) -> (i32, i32) {
    %c0_i32 = arith.constant 0 : i32
    %c0_i32_0 = arith.constant 0 : i32
    %c0_i32_1 = arith.constant 0 : i32
    return %c0_i32, %c0_i32_0 : i32, i32
  }
  func.func @transform_5(%arg0: i32) -> (i32, i32) {
    %c0_i32 = arith.constant 0 : i32
    %c0_i32_0 = arith.constant 0 : i32
    %c0_i32_1 = arith.constant 0 : i32
    return %c0_i32, %c0_i32_0 : i32, i32
  }
  func.func @transform_6(%arg0: i32) -> (i32, i32) {
    %c0_i32 = arith.constant 0 : i32
    %c0_i32_0 = arith.constant 0 : i32
    %c0_i32_1 = arith.constant 0 : i32
    return %c0_i32, %c0_i32_0 : i32, i32
  }
  func.func @transform_7(%arg0: i32) -> (i32, i32, i32) {
    %c0_i32 = arith.constant 0 : i32
    %c0_i32_0 = arith.constant 0 : i32
    %c0_i32_1 = arith.constant 0 : i32
    return %arg0, %c0_i32, %c0_i32_0 : i32, i32, i32
  }
}

</mosaic_0001>

<bundles_post_ra>
// kernel: tpu_custom_call.1
= control target key start
LH: loop header
LB: loop body
LE: loop exit
PB: predicated region body
PF: predicated region fallthrough
CT: control target
= control target key end

     0   :  { %12 = vsyncpa [#allocation3], 0  ;;  %s1215_s0 = inlined_call_operand.vmem [shape: f32[2,16,128], index: 0, kind: input, shape index: {}]   ;;  %s1216_s1 = inlined_call_operand.vmem [shape: bf16[128,64], index: 1, kind: input, shape index: {}]   ;;  %s1217_s2 = inlined_call_operand.vmem [shape: f32[1,64], index: 2, kind: input, shape index: {}]   ;;  %s1218_s3 = inlined_call_operand.vmem [shape: bf16[192,64], index: 3, kind: input, shape index: {}]   ;;  %s1219_s4 = inlined_call_operand.vmem [shape: f32[1,64], index: 4, kind: input, shape index: {}]   ;;  %s1220_s5 = inlined_call_operand.vmem [shape: bf16[64,128], index: 5, kind: input, shape index: {}]   ;;  %s1221_s6 = inlined_call_operand.vmem [shape: f32[1,128], index: 6, kind: input, shape index: {}]   ;;  %s1222_s7 = inlined_call_operand.hbm [shape: f32[2,16,128], index: 7, kind: output, shape index: {}]  }
   0x1   :  { %14 = vsyncpa [#allocation3 + $0x1], 0  ;;  %s1004_s24 = smov 0   ;;  %s1006_s25 = smov 0  }
   0x2   :  { %s1008_s26 = smov 0   ;;  %s1010_s27 = smov 0  }
   0x3 LB: > { %s1025_s28 = sadd.s32 4294967295, %s955_s27   ;;  %s735_s29 = sadd.s32 4294967294, %s955_s27   ;;  %s955_s27 = sphi %s1010_s27, %s1228_s27   ;;  %s951_s26 = sphi %s1008_s26, %s1227_s26   ;;  %s947_s25 = sphi %s1006_s25, %s1226_s25   ;;  %s943_s24 = sphi %s1004_s24, %s1225_s24  }
   0x4   : > { %s1029_s30 = sadd.s32 1, %s955_s27   ;;  %s179_s8 = sadd.s32 1, %s951_s26 }
   0x5   : > { %s176_s9 = ssub.s32 %s955_s27, %s1029_s30  ;;  %p189_p0 = scmp.ne.s32.totalorder %s951_s26, %s947_s25 }
   0x6   : > { %p177_p1 = scmp.eq.s32.totalorder %s176_s9, 0  ;;  %p190_p2 = scmp.eq.s32.totalorder %s1025_s28, 1 }
   0x7   : > { %p195_p3 = scmp.ne.s32.totalorder %s947_s25, %s943_s24  ;;  %p196_p4 = scmp.eq.s32.totalorder %s735_s29, 1 }
   0x8   : > { %s1040_s10 = scalar_select %p177_p1, %s951_s26, %s179_s8  }
   0x9   : > { %p1042_p5 = por %p190_p2, %p189_p0  ;;  %p1046_p6 = por %p196_p4, %p195_p3 }
   0xa   : > { %p738_p7 = scmp.ge.s32.totalorder %s955_s27, 1  ;;  %p240_p8 = scmp.lt.s32.totalorder %s955_s27, 3 }
   0xc   : > { %p241_p9 = pnand %p738_p7, %p240_p8 }
   0xd   : > { %v869_v0 = vld [vmem:[%s1216_s1] sm:$0xff] (!%p241_p9)   ;;  %v957_v1 = vmov (!%p241_p9), 0.0   ;;  %v870_v2 = vld [vmem:[%s1216_s1 + $0x8] sm:$0xff] (!%p241_p9)   ;;  %vm958_vm0 = vmmov (!%p241_p9), 0   ;;  %p272_p10 = scmp.lt.s32.totalorder (!%p241_p9), %s1025_s28, 1  ;;  %v871_v3 = vld [vmem:[%s1216_s1 + $0x10] sm:$0xff] (!%p241_p9)  }
   0xe   : > { %244 = sbr.rel (%p241_p9) target bundleno = 835 (0x343), region = 48  ;;  %792 = vmatprep.subr.bf16.mxu0 (!%p241_p9), %v957_v1  ;;  %808 = vmatprep.mubr.msk.bf16.mxu0 (!%p241_p9), %vm958_vm0, %v957_v1  ;;  %v872_v4 = vld [vmem:[%s1216_s1 + $0x18] sm:$0xff] (!%p241_p9)   ;;  %v873_v5 = vld [vmem:[%s1216_s1 + $0x20] sm:$0xff] (!%p241_p9)   ;;  %v874_v6 = vld [vmem:[%s1216_s1 + $0x28] sm:$0xff] (!%p241_p9)   ;;  %v959_v13 = vmov (!%p241_p9), 0   ;;  %vm404_vm1 = vcmask (!%p241_p9), 1046528  }
   0xf   : > { %793 = vmatpush3.bf16.msra.mxu0 (!%p241_p9), %v869_v0  ;;  %v875_v7 = vld [vmem:[%s1216_s1 + $0x30] sm:$0xff] (!%p241_p9)   ;;  %v876_v8 = vld [vmem:[%s1216_s1 + $0x38] sm:$0xff] (!%p241_p9)   ;;  %v877_v12 = vld [vmem:[%s1218_s3] sm:$0xff] (!%p241_p9)   ;;  %528 = vmatprep.subr.bf16.mxu1 (!%p241_p9), %v959_v13  ;;  %vm397_vm2 = vcmask (!%p241_p9), 1040384   ;;  %vm417_vm3 = vcmask (!%p241_p9), 523264   ;;  %s960_s22 = smov (!%p241_p9), 64  }
  0x10   : > { %794 = vmatprep.subr.bf16.mxu0 (!%p241_p9), %v957_v1  ;;  %529 = vmatpush1.bf16.msra.mxu1 (!%p241_p9), %v877_v12  ;;  %v878_v14 = vld [vmem:[%s1218_s3 + $0x8] sm:$0xff] (!%p241_p9)   ;;  %v879_v15 = vld [vmem:[%s1218_s3 + $0x10] sm:$0xff] (!%p241_p9)   ;;  %v880_v16 = vld [vmem:[%s1218_s3 + $0x18] sm:$0xff] (!%p241_p9)   ;;  %s269_s15 = sand.u32 (!%p241_p9), 1, %s947_s25  }
  0x11   : > { %530 = vmatprep.subr.bf16.mxu1 (!%p241_p9), %v959_v13  ;;  %v881_v17 = vld [vmem:[%s1218_s3 + $0x20] sm:$0xff] (!%p241_p9)   ;;  %v882_v18 = vld [vmem:[%s1218_s3 + $0x28] sm:$0xff] (!%p241_p9)   ;;  %v883_v19 = vld [vmem:[%s1218_s3 + $0x30] sm:$0xff] (!%p241_p9)   ;;  %s739_s16 = sshll.u32 (!%p241_p9), %s269_s15, 4 }
  0x12   : > { %v884_v20 = vld [vmem:[%s1218_s3 + $0x38] sm:$0xff] (!%p241_p9)   ;;  %v885_v21 = vld [vmem:[%s1218_s3 + $0x40] sm:$0xff] (!%p241_p9)   ;;  %v886_v22 = vld [vmem:[%s1218_s3 + $0x48] sm:$0xff] (!%p241_p9)   ;;  %s271_s19 = scalar_lea.vmem (!%p241_p9), [#allocation2], %s739_s16 }
  0x13   : > { %795 = vmatpush3.bf16.msra.mxu0 (!%p241_p9), %v870_v2  ;;  %v887_v23 = vld [vmem:[%s1218_s3 + $0x50] sm:$0xff] (!%p241_p9)   ;;  %v888_v24 = vld [vmem:[%s1218_s3 + $0x58] sm:$0xff] (!%p241_p9)   ;;  %v889_v25 = vld [vmem:[%s1220_s5] sm:$0xff] (!%p241_p9)   ;;  %s673_s20 = sshll.u32 (!%p241_p9), %s271_s19, 4  ;;  %s1166_s20 = int_to_ptr.vmem [resolvable:$true] %s673_s20 }
  0x14   : > { %796 = vmatprep.subr.bf16.mxu0 (!%p241_p9), %v957_v1  ;;  %531 = vmatpush1.bf16.msra.mxu1 (!%p241_p9), %v878_v14  ;;  %v742_v26 = vld [vmem:[%s1217_s2] ss:$0 sm:$0xff] (!%p241_p9)  ;;  %v890_v27 = vld [vmem:[%s1220_s5 + $0x8] sm:$0xff] (!%p241_p9)   ;;  %v891_v49 = vld [vmem:[%s1220_s5 + $0x10] sm:$0xff] (!%p241_p9)   ;;  %s893_s8 = scalar_lea.vmem (!%p241_p9), %s1166_s20, 256 }
  0x15   : > { %s273_s21 = scalar_select %p272_p10, %s1025_s28, 1  ;;  %532 = vmatprep.subr.bf16.mxu1 %v959_v13  ;;  %v892_v50 = vld [vmem:[%s1220_s5 + $0x18] sm:$0xff]   ;;  %v751_v51 = vld [vmem:[%s1219_s4] ss:$0 sm:$0xff] }
  0x16   : > { %v765_v61 = vld [vmem:[%s1221_s6] ss:$0 sm:$0xff]  ;;  %p894_p11 = scmp.ne.s32.totalorder %s1166_s20, %s893_s8 }
  0x17   : > { %797 = vmatpush3.bf16.msra.mxu0 %v871_v3  ;;  %s776_s9 = sshll.u32 %s273_s21, 4  ;;  %s777_s21 = sshll.u32 %s1025_s28, 8 }
  0x18   : > { %798 = vmatprep.subr.bf16.mxu0 %v957_v1  ;;  %s276_s17 = scalar_lea.vmem %s1215_s0, %s776_s9  ;;  %533 = vmatpush1.bf16.msra.mxu1 %v879_v15  ;;  %s1171_s29 = scalar_lea.hbm %s1222_s7, %s777_s21 }
  0x19   : > { %v1090_v9 = vld [vmem:[%s276_s17] sm:$0xff]  ;;  %v1092_v10 = vld [vmem:[%s276_s17 + $0x8] sm:$0xff]  ;;  %534 = vmatprep.subr.bf16.mxu1 %v959_v13  ;;  %s1174_s28 = scalar_lea.sflag [#allocation3], %s269_s15  ;;  %p895_p12 = pnand %p894_p11, %p1042_p5 }
  0x1a   : > { %v280_v11 = vpack.c.bf16 %v1092_v10, %v1090_v9  ;;  %s961_s9 = smov [#allocation2]  }
  0x1b   : > { %799 = vmatpush3.bf16.msra.mxu0 %v872_v4  ;;  %p896_p13 = pneg %p895_p12  ;;  %s897_s13 = sshll.u32 %s961_s9, 4  ;;  %s898_s13 = int_to_ptr.vmem [resolvable:$false] %s897_s13 }
  0x1c   : > { %800 = vmatprep.subr.bf16.mxu0 %v957_v1  ;;  %535 = vmatpush1.bf16.msra.mxu1 %v880_v16  ;;  %s899_s14 = scalar_lea.vmem %s898_s13, 512  ;;  %p900_p0 = scmp.lt.s32.totalorder %s1166_s20, %s898_s13 }
  0x1d   : > { %536 = vmatprep.subr.bf16.mxu1 %v959_v13  ;;  %p901_p1 = scmp.lt.s32.totalorder %s899_s14, %s893_s8 }
  0x1f   : > { %801 = vmatpush3.bf16.msra.mxu0 %v873_v5  ;;  %p902_p2 = por %p901_p1, %p900_p0 }
  0x20   : > { %802 = vmatprep.subr.bf16.mxu0 %v957_v1  ;;  %537 = vmatpush1.bf16.msra.mxu1 %v881_v17 }
  0x21   : > { %538 = vmatprep.subr.bf16.mxu1 %v959_v13  ;;  %p903_p3 = pnand %p902_p2, %p896_p13 }
  0x23   : > { %803 = vmatpush3.bf16.msra.mxu0 %v874_v6 }
  0x24   : > { %804 = vmatprep.subr.bf16.mxu0 %v957_v1  ;;  %539 = vmatpush1.bf16.msra.mxu1 %v882_v18 }
  0x25   : > { %540 = vmatprep.subr.bf16.mxu1 %v959_v13 }
  0x27   : > { %805 = vmatpush3.bf16.msra.mxu0 %v875_v7 }
  0x28   : > { %806 = vmatprep.subr.bf16.mxu0 %v957_v1  ;;  %541 = vmatpush1.bf16.msra.mxu1 %v883_v19 }
  0x29   : > { %542 = vmatprep.subr.bf16.mxu1 %v959_v13 }
  0x2b   : > { %807 = vmatpush3.bf16.msra.mxu0 %v876_v8 }
  0x2c   : > { %812 = vmatprep.subr.bf16.mxu0 %v957_v1  ;;  %543 = vmatpush1.bf16.msra.mxu1 %v884_v20 }
  0x2d   : > { %544 = vmatprep.subr.bf16.mxu1 %v959_v13 }
  0x2e   : > { %809 = vmatmul.mubr.bf16.vlgmr.msra.gmra.mrb[0].mxu0 %v280_v11 }
  0x2f   : > { %820 = vmatprep.mubr.msk.bf16.mxu0 %vm958_vm0, %v957_v1  ;;  %813 = vmatpush3.bf16.msra.mxu0 %v889_v25 }
  0x30   : > { %545 = vmatpush1.bf16.msra.mxu1 %v885_v21  ;;  %814 = vmatprep.subr.bf16.mxu0 %v957_v1 }
  0x31   : > { %546 = vmatprep.subr.bf16.mxu1 %v959_v13 }
  0x33   : > { %815 = vmatpush3.bf16.msra.mxu0 %v890_v27 }
  0x34   : > { %547 = vmatpush1.bf16.msra.mxu1 %v886_v22  ;;  %816 = vmatprep.subr.bf16.mxu0 %v957_v1 }
  0x35   : > { %548 = vmatprep.subr.bf16.mxu1 %v959_v13 }
  0x37   : > { %817 = vmatpush3.bf16.msra.mxu0 %v891_v49 }
  0x38   : > { %549 = vmatpush1.bf16.msra.mxu1 %v887_v23  ;;  %818 = vmatprep.subr.bf16.mxu0 %v957_v1 }
  0x39   : > { %550 = vmatprep.subr.bf16.mxu1 %v959_v13 }
  0x3b   : > { %819 = vmatpush3.bf16.msra.mxu0 %v892_v50 }
  0x3c   : > { %551 = vmatpush1.bf16.msra.mxu1 %v888_v24 }
 0x101   : > { %v386_v28 = vpop.f32.mrb[0].mxu0 }
 0x102   : > { %v387_v29 = vadd.f32 %v742_v26, %v386_v28  ;;  %v810_v30 = vpop.f32.mrb[1].mxu0 }
 0x103   : > { %v389_v31 = vpop.f32.mrb[2].mxu0 }
 0x104   : > { %v393_v32 = vmax.f32 %v387_v29, 0.0  ;;  %v390_v33 = vadd.f32 %v742_v26, %v389_v31  ;;  %v811_v34 = vpop.f32.mrb[3].mxu0 }
 0x106   : > { %v398_v35 = vrot.slane %v393_v32, 7  ;;  %v394_v36 = vmax.f32 %v390_v33, 0.0  ;;  %v405_v37 = vrot.slane %v393_v32, 1 }
 0x108   : > { %v399_v38 = vrot.slane %v394_v36, 7  ;;  %v412_v39 = vpack.c.bf16 %v394_v36, %v393_v32  ;;  %v406_v40 = vrot.slane %v394_v36, 1  ;;  %v403_v44 = vsel %vm397_vm2, 0.0, %v398_v35 }
 0x10a   : > { %415 = vrot.lane.b32.xlu0 %v412_v39, %s960_s22  ;;  %v407_v41 = vsel %vm404_vm1, %v405_v37, %v406_v40  ;;  %v410_v42 = vsel %vm404_vm1, %v406_v40, 0.0  ;;  %v400_v43 = vsel %vm397_vm2, %v398_v35, %v399_v38 }
 0x10b   : > { %v413_v45 = vpack.c.bf16 %v410_v42, %v407_v41  ;;  %v411_v46 = vpack.c.bf16 %v400_v43, %v403_v44 }
 0x10d   : > { %764 = vmatprep.mubr.msk.bf16.mxu1 %vm417_vm3, %v413_v45 }
 0x17c   : > { %v416_v47 = vpop.permute.xlu0 %415 }
 0x17d   : > { %v420_v48 = vsel %vm417_vm3, %v411_v46, %v416_v47 }
 0x17e   : > { %561 = vmatmul.mubr.bf16.vlgmr.msra.gmra.mrb[0].mxu1 %v420_v48 }
 0x251   : > { %v562_v52 = vpop.f32.mrb[0].mxu1 }
 0x252   : > { %v563_v53 = vadd.f32 %v751_v51, %v562_v52  ;;  %v564_v54 = vpop.f32.mrb[1].mxu1 }
 0x253   : > { %v565_v55 = vpop.f32.mrb[2].mxu1 }
 0x254   : > { %v566_v56 = vadd.f32 %v751_v51, %v565_v55  ;;  %v567_v57 = vpop.f32.mrb[3].mxu1  ;;  %v569_v58 = vmax.f32 %v563_v53, 0.0 }
 0x256   : > { %v570_v59 = vmax.f32 %v566_v56, 0.0 }
 0x258   : > { %v571_v60 = vpack.c.bf16 %v570_v59, %v569_v58 }
 0x25a   : > { %821 = vmatmul.mubr.msk.bf16.vlgmr.msra.gmra.mrb[4].mxu0 %vm417_vm3, %v571_v60 }
 0x32d   : > { %v648_v62 = vpop.f32.mrb[4].mxu0 }
 0x32e   : > { %v649_v63 = vadd.f32 %v765_v61, %v648_v62  ;;  %v822_v0 = vpop.f32.mrb[5].mxu0 }
 0x32f   : > { %v651_v1 = vpop.f32.mrb[6].mxu0 }
 0x330   : > { %v655_v2 = vadd.f32 %v649_v63, %v1090_v9  ;;  %v652_v3 = vadd.f32 %v765_v61, %v651_v1  ;;  %v823_v4 = vpop.f32.mrb[7].mxu0 }
 0x332   : > { %657 = vst [vmem:[%s271_s19] sm:$0xff] %v655_v2  ;;  %v656_v5 = vadd.f32 %v652_v3, %v1092_v10 }
 0x334   : > { %658 = vst [vmem:[%s271_s19 + $0x8] sm:$0xff] %v656_v5 }
 0x335   : > { %906 = shalt.err (!%p903_p3)
}
 0x336   : > { %s907_s15 = scalar_lea.hbm %s1171_s29, 256  ;;  %s911_s18 = scalar_lea.hbm %s1222_s7, 512 }
 0x337   : > { %p908_p4 = scmp.ne.s32.totalorder %s1171_s29, %s907_s15  ;;  %p912_p9 = scmp.lt.u32.totalorder %s1171_s29, %s1222_s7 }
 0x338   : > { %p913_p10 = scmp.lt.u32.totalorder %s911_s18, %s907_s15  ;;  %p915_p12 = scmp.lt.u32.totalorder %s907_s15, %s1171_s29 }
 0x339   : > { %p909_p7 = pnand %p908_p4, %p1042_p5 }
 0x33a   : > { %p914_p11 = por %p913_p10, %p912_p9 }
 0x33b   : > { %p910_p8 = pneg %p909_p7 }
 0x33c   : > { %p916_p13 = por %p915_p12, %p914_p11 }
 0x33e   : > { %p917_p0 = pnand %p916_p13, %p910_p8 }
 0x340   : > { %920 = shalt.err (!%p917_p0)
}
 0x341   : > { %s962_s22 = smov 128   ;;  %s963_s23 = smov 8  }
 0x342   : > { %824 = dma.vmem_to_hbm [thread:$0]  (%p1042_p5), %s1166_s20, 256, %s1171_s29, %s1174_s28, %s962_s22, %s962_s22, %s963_s23  }
 0x343 PF: > { %p830_p1 = scmp.ge.s32.totalorder %s955_s27, 2  ;;  %s688_s8 = sand.u32 1, %s943_s24  }
 0x344   : > { %s689_s9 = scalar_lea.sflag [#allocation3], %s688_s8 }
 0x345   : > { %p827_p2 = pnand %p830_p1, %p1046_p6 }
 0x347   : > { %938 = dma.done.wait (!%p827_p2), %s689_s9, 256  }
 0x348   : > { %940 = vsyncadd (!%p827_p2), %s689_s9, 4294967040  ;;  %p17_p3 = scmp.ge.s32.totalorder %s1029_s30, 4   ;;  %s1225_s24 = smov %s947_s25 }
 0x349   : > { %s1226_s25 = smov %s951_s26  ;;  %s1227_s26 = smov %s1040_s10 }
 0x34a   : > { %s1228_s27 = smov %s1029_s30  ;;  %19 = sbr.rel (!%p17_p3) target bundleno = 3 (0x3), region = 83 }
 0x351   :  { %694 = vsyncpa [#allocation3], 1 }
 0x352   :  { %696 = vsyncpa [#allocation3 + $0x1], 1 }

</bundles_post_ra>
